<compile_context>
chip_gen: v7x
topology: tpu7x:2x2x1
jax: 0.10.0
libtpu: 0.0.40
codegen_flags: <defaults>
</compile_context>

<pallas_src>
import functools

import jax
import jax.numpy as jnp
from jax.experimental import pallas as pl
from jax.experimental.pallas import tpu as pltpu


C_STEM_PAD = 128          # stem channels zero-padded to a full lane width
VMEM_LIMIT = 32 * 1024 * 1024


# ----------------------------------------------------------------------------
# Kernel 1: fused conv-stem (matmul+bias+ReLU) -> GAP -> fc
#   grid = (view, batch, spatial_tile); spatial_tile is the reduction axis.
# ----------------------------------------------------------------------------
def _stem_kernel(p_ref, cw_ref, cb_ref, fw_ref, fb_ref, o_ref, acc_ref, *, inv_hw):
    t = pl.program_id(2)

    @pl.when(t == 0)
    def _init():
        acc_ref[...] = jnp.zeros_like(acc_ref)

    # (TILE_HW, 9C) bf16 @ (9C, CP) bf16 -> f32, + bias, ReLU
    conv = jnp.dot(p_ref[...], cw_ref[...], preferred_element_type=jnp.float32)
    conv = jnp.maximum(conv + cb_ref[...], 0.0)
    # partial sum for the global average pool (stays in VMEM)
    acc_ref[...] += jnp.sum(conv, axis=0, keepdims=True)

    @pl.when(t == pl.num_programs(2) - 1)
    def _finalize():
        pooled = (acc_ref[...] * inv_hw).astype(fw_ref.dtype)        # (1, CP)
        o_ref[...] = (
            jnp.dot(pooled, fw_ref[...], preferred_element_type=jnp.float32)
            + fb_ref[...]
        )


def stem_forward(patches, conv_w, conv_b, fc_w, fc_b, *, tile_hw):
    V, B, HW, K9 = patches.shape
    CP = conv_w.shape[-1]
    D = fc_w.shape[-1]
    n_sp = HW // tile_hw

    out = pl.pallas_call(
        functools.partial(_stem_kernel, inv_hw=float(1.0 / HW)),
        out_shape=jax.ShapeDtypeStruct((V, B, 1, D), jnp.float32),
        grid=(V, B, n_sp),
        in_specs=[
            pl.BlockSpec((None, None, tile_hw, K9), lambda v, b, t: (v, b, t, 0)),
            pl.BlockSpec((None, K9, CP), lambda v, b, t: (v, 0, 0)),
            pl.BlockSpec((None, 1, CP), lambda v, b, t: (v, 0, 0)),
            pl.BlockSpec((None, CP, D), lambda v, b, t: (v, 0, 0)),
            pl.BlockSpec((None, 1, D), lambda v, b, t: (v, 0, 0)),
        ],
        out_specs=pl.BlockSpec((None, None, 1, D), lambda v, b, t: (v, b, 0, 0)),
        scratch_shapes=[pltpu.VMEM((1, CP), jnp.float32)],
        compiler_params=pltpu.CompilerParams(
            dimension_semantics=("parallel", "parallel", "arbitrary"),
            vmem_limit_bytes=VMEM_LIMIT,
        ),
    )(patches, conv_w, conv_b, fc_w, fc_b)
    return out.reshape(V, B, D)


# ----------------------------------------------------------------------------
# Kernel 2: fused head
#   length-1 attention == single affine map (softmax over one key is 1):
#     attended = x @ (wv.T @ wo.T) + (bv @ wo.T + bo)
#   then residual + LayerNorm, projector (Linear-ReLU-Linear-LayerNorm), L2.
#   grid = (view,); attention weights shared, projector weights per-view.
# ----------------------------------------------------------------------------
def _head_kernel(x_ref, wf_ref, bf_ref, g1_ref, bt1_ref,
                 w1_ref, b1_ref, w2_ref, b2_ref, g2_ref, bt2_ref, o_ref):
    x = x_ref[...]                                                   # (B, D) f32

    att = (
        jnp.dot(x.astype(wf_ref.dtype), wf_ref[...],
                preferred_element_type=jnp.float32)
        + bf_ref[...]
    )
    y = att + x
    mu = jnp.mean(y, axis=-1, keepdims=True)
    var = jnp.mean(jnp.square(y - mu), axis=-1, keepdims=True)
    y = (y - mu) * jax.lax.rsqrt(var + 1e-5) * g1_ref[...] + bt1_ref[...]

    h = (
        jnp.dot(y.astype(w1_ref.dtype), w1_ref[...],
                preferred_element_type=jnp.float32)
        + b1_ref[...]
    )
    h = jnp.maximum(h, 0.0)
    z = (
        jnp.dot(h.astype(w2_ref.dtype), w2_ref[...],
                preferred_element_type=jnp.float32)
        + b2_ref[...]
    )
    mu = jnp.mean(z, axis=-1, keepdims=True)
    var = jnp.mean(jnp.square(z - mu), axis=-1, keepdims=True)
    z = (z - mu) * jax.lax.rsqrt(var + 1e-5) * g2_ref[...] + bt2_ref[...]

    nrm = jnp.sqrt(jnp.sum(z * z, axis=-1, keepdims=True))           # F.normalize
    o_ref[...] = z / jnp.maximum(nrm, 1e-12)


def head_forward(feats, wf, bf, g1, bt1, w1, b1, w2, b2, g2, bt2):
    V, B, D = feats.shape
    Dh = w2.shape[-1]
    return pl.pallas_call(
        _head_kernel,
        out_shape=jax.ShapeDtypeStruct((V, B, Dh), jnp.float32),
        grid=(V,),
        in_specs=[
            pl.BlockSpec((None, B, D), lambda v: (v, 0, 0)),
            pl.BlockSpec((D, D), lambda v: (0, 0)),      # shared fused attn weight
            pl.BlockSpec((1, D), lambda v: (0, 0)),
            pl.BlockSpec((1, D), lambda v: (0, 0)),
            pl.BlockSpec((1, D), lambda v: (0, 0)),
            pl.BlockSpec((None, D, D), lambda v: (v, 0, 0)),
            pl.BlockSpec((None, 1, D), lambda v: (v, 0, 0)),
            pl.BlockSpec((None, D, Dh), lambda v: (v, 0, 0)),
            pl.BlockSpec((None, 1, Dh), lambda v: (v, 0, 0)),
            pl.BlockSpec((None, 1, Dh), lambda v: (v, 0, 0)),
            pl.BlockSpec((None, 1, Dh), lambda v: (v, 0, 0)),
        ],
        out_specs=pl.BlockSpec((None, B, Dh), lambda v: (v, 0, 0)),
        compiler_params=pltpu.CompilerParams(
            dimension_semantics=("parallel",),
            vmem_limit_bytes=VMEM_LIMIT,
        ),
    )(feats, wf, bf, g1, bt1, w1, b1, w2, b2, g2, bt2)


# ----------------------------------------------------------------------------
# Host-side glue: im2col for the 3x3 / pad=1 / stride=1 stem conv (NHWC)
# ----------------------------------------------------------------------------
def im2col_3x3(x_nhwc):
    B, H, W, C = x_nhwc.shape
    xp = jnp.pad(x_nhwc, ((0, 0), (1, 1), (1, 1), (0, 0)))
    cols = [xp[:, dh:dh + H, dw:dw + W, :] for dh in range(3) for dw in range(3)]
    p = jnp.concatenate(cols, axis=-1)                  # (B, H, W, 9*C)
    return p.reshape(B, H * W, 9 * C)


# ----------------------------------------------------------------------------
# Parameters (deterministic, synthetic) + prep (fuse / transpose / pad / stack)
# ----------------------------------------------------------------------------
def init_params(key, feature_dims=32, c_in=3, c_stem=8):
    ks = jax.random.split(key, 10)
    s = 0.02
    D, Dh = feature_dims, feature_dims // 2

    def proj_params(k0, k1):
        return dict(
            w1=jax.random.normal(k0, (D, D), jnp.float32) * s,      # PyTorch (out,in)
            b1=jnp.zeros((D,), jnp.float32),
            w2=jax.random.normal(k1, (Dh, D), jnp.float32) * s,
            b2=jnp.zeros((Dh,), jnp.float32),
            gamma=jnp.ones((Dh,), jnp.float32),
            beta=jnp.zeros((Dh,), jnp.float32),
        )

    def encoder_params(k0, k1):
        return dict(
            conv_w=jax.random.normal(k0, (9 * c_in, c_stem), jnp.float32) * s,
            conv_b=jnp.zeros((c_stem,), jnp.float32),
            fc_w=jax.random.normal(k1, (c_stem, D), jnp.float32) * s,
            fc_b=jnp.zeros((D,), jnp.float32),
        )

    # nn.MultiheadAttention keeps in_proj_weight (3D, D); for a length-1 sequence
    # only the V slice matters (softmax over one key == 1).
    in_proj_w = jax.random.normal(ks[0], (3 * D, D), jnp.float32) * s
    in_proj_b = jnp.zeros((3 * D,), jnp.float32)
    attn = dict(
        wv=in_proj_w[2 * D:3 * D], bv=in_proj_b[2 * D:3 * D],
        wo=jax.random.normal(ks[1], (D, D), jnp.float32) * s,
        bo=jnp.zeros((D,), jnp.float32),
        gamma=jnp.ones((D,), jnp.float32), beta=jnp.zeros((D,), jnp.float32),
    )
    return dict(
        street_enc=encoder_params(ks[2], ks[3]),
        sat_enc=encoder_params(ks[4], ks[5]),
        attn=attn,
        street_proj=proj_params(ks[6], ks[7]),
        sat_proj=proj_params(ks[8], ks[9]),
    )


def prepare_params(raw):
    """Fuse the length-1 attention, transpose to (D_in, D_out), pad the stem
    channel dim to 128 lanes, stack per-view weights, and cast matmul weights
    to bf16 (biases / LN params stay f32)."""
    a = raw["attn"]
    D = a["wo"].shape[0]
    wf = (a["wv"].T @ a["wo"].T).astype(jnp.bfloat16)                # (D, D)
    bf = (a["bv"] @ a["wo"].T + a["bo"]).reshape(1, D)

    def prep_enc(enc):
        K9, cs = enc["conv_w"].shape
        cw = jnp.zeros((K9, C_STEM_PAD), jnp.float32).at[:, :cs].set(enc["conv_w"])
        cb = jnp.zeros((1, C_STEM_PAD), jnp.float32).at[0, :cs].set(enc["conv_b"])
        fw = jnp.zeros((C_STEM_PAD, D), jnp.float32).at[:cs, :].set(enc["fc_w"])
        fb = enc["fc_b"].reshape(1, D)
        return cw.astype(jnp.bfloat16), cb, fw.astype(jnp.bfloat16), fb

    scw, scb, sfw, sfb = prep_enc(raw["street_enc"])
    tcw, tcb, tfw, tfb = prep_enc(raw["sat_enc"])

    def prep_proj(p):
        return (p["w1"].T.astype(jnp.bfloat16), p["b1"].reshape(1, -1),
                p["w2"].T.astype(jnp.bfloat16), p["b2"].reshape(1, -1),
                p["gamma"].reshape(1, -1), p["beta"].reshape(1, -1))

    sw1, sb1, sw2, sb2, sg, sbt = prep_proj(raw["street_proj"])
    tw1, tb1, tw2, tb2, tg, tbt = prep_proj(raw["sat_proj"])

    return dict(
        conv_w=jnp.stack([scw, tcw]), conv_b=jnp.stack([scb, tcb]),
        fc_w=jnp.stack([sfw, tfw]), fc_b=jnp.stack([sfb, tfb]),
        attn_w=wf, attn_b=bf,
        attn_gamma=a["gamma"].reshape(1, D), attn_beta=a["beta"].reshape(1, D),
        w1=jnp.stack([sw1, tw1]), b1=jnp.stack([sb1, tb1]),
        w2=jnp.stack([sw2, tw2]), b2=jnp.stack([sb2, tb2]),
        ln_gamma=jnp.stack([sg, tg]), ln_beta=jnp.stack([sbt, tbt]),
    )


# ----------------------------------------------------------------------------
# Forward pass: 2 pallas_calls total (stem, head)
# ----------------------------------------------------------------------------
@jax.jit
def cross_view_matcher(street_img, satellite_img, params):
    # TODO(synk): differing street/satellite spatial sizes would need separate
    # per-view stem calls; the toy setup uses matching shapes so both views are
    # stacked on a leading "view" axis and processed by one kernel.
    assert street_img.shape == satellite_img.shape
    B, C, H, W = street_img.shape
    D = params["attn_w"].shape[0]
    HW = H * W
    tile_hw = 128 if HW % 128 == 0 else HW

    p_street = im2col_3x3(jnp.transpose(street_img, (0, 2, 3, 1)))
    p_sat = im2col_3x3(jnp.transpose(satellite_img, (0, 2, 3, 1)))
    patches = jnp.stack([p_street, p_sat], axis=0).astype(jnp.bfloat16)  # (2,B,HW,9C)

    feats = stem_forward(patches, params["conv_w"], params["conv_b"],
                         params["fc_w"], params["fc_b"], tile_hw=tile_hw)  # (2,B,D)

    emb = head_forward(feats, params["attn_w"], params["attn_b"],
                       params["attn_gamma"], params["attn_beta"],
                       params["w1"], params["b1"], params["w2"], params["b2"],
                       params["ln_gamma"], params["ln_beta"])              # (2,B,Dh)
    return emb[0], emb[1]


# ----------------------------------------------------------------------------
# main
# ----------------------------------------------------------------------------
if __name__ == "__main__":
    key = jax.random.PRNGKey(0)
    k_img1, k_img2, k_params = jax.random.split(key, 3)

    B, C, H, W = 2, 3, 16, 16
    feature_dims = 32   # small stand-in for 2048 (divisible by num_heads=8)

    street_img = jax.random.normal(k_img1, (B, C, H, W), jnp.float32)
    satellite_img = jax.random.normal(k_img2, (B, C, H, W), jnp.float32)

    raw = init_params(k_params, feature_dims=feature_dims, c_in=C, c_stem=8)
    params = prepare_params(raw)

    street_emb, sat_emb = cross_view_matcher(street_img, satellite_img, params)
    jax.block_until_ready((street_emb, sat_emb))

    assert street_emb.shape == (B, feature_dims // 2)
    assert sat_emb.shape == (B, feature_dims // 2)
    assert bool(jnp.all(jnp.isfinite(street_emb)))
    assert bool(jnp.all(jnp.isfinite(sat_emb)))
    print("KERNEL_OK")
</pallas_src>

<mosaic_0001>
module attributes {stable_mosaic.version = 11 : i64} {
  func.func @_stem_kernel(%arg0: i32, %arg1: i32, %arg2: i32, %arg3: memref<1x1x128x27xbf16, #tpu.memory_space<vmem>>, %arg4: memref<1x27x128xbf16, #tpu.memory_space<vmem>>, %arg5: memref<1x1x128xf32, #tpu.memory_space<vmem>>, %arg6: memref<1x128x32xbf16, #tpu.memory_space<vmem>>, %arg7: memref<1x1x32xf32, #tpu.memory_space<vmem>>, %arg8: memref<1x1x1x32xf32, #tpu.memory_space<vmem>>, %arg9: memref<1x128xf32, #tpu.memory_space<vmem>>) attributes {dimension_semantics = [#tpu.dimension_semantics<parallel>, #tpu.dimension_semantics<parallel>, #tpu.dimension_semantics<arbitrary>], iteration_bounds = array<i64: 2, 2, 2>, scalar_prefetch = 0 : i64, scratch_operands = 1 : i64, tpu.core_type = #tpu.core_type<tc>, window_params = [{transform_indices = @transform_0, window_bounds = array<i64: 1, 1, 128, 27>}, {transform_indices = @transform_1, window_bounds = array<i64: 1, 27, 128>}, {transform_indices = @transform_2, window_bounds = array<i64: 1, 1, 128>}, {transform_indices = @transform_3, window_bounds = array<i64: 1, 128, 32>}, {transform_indices = @transform_4, window_bounds = array<i64: 1, 1, 32>}, {transform_indices = @transform_5, window_bounds = array<i64: 1, 1, 1, 32>}]} {
    %c0_i32 = arith.constant 0 : i32
    %0 = arith.cmpi eq, %arg2, %c0_i32 : i32
    %1 = arith.extui %0 : i1 to i32
    %c0_i32_0 = arith.constant 0 : i32
    %2 = arith.cmpi ne, %1, %c0_i32_0 : i32
    scf.if %2 {
      %cst_17 = arith.constant 0.000000e+00 : f32
      %22 = vector.broadcast %cst_17 : f32 to vector<1x128xf32>
      %c0_18 = arith.constant 0 : index
      %c0_19 = arith.constant 0 : index
      %23 = vector.load %arg9[%c0_18, %c0_19] : memref<1x128xf32, #tpu.memory_space<vmem>>, vector<1x128xf32>
      tpu.vector_store %arg9[%c0_18, %c0_19], %22 {strides = array<i32>} : memref<1x128xf32, #tpu.memory_space<vmem>>, vector<1x128xf32>,
    } else {
    }
    %c0 = arith.constant 0 : index
    %c0_1 = arith.constant 0 : index
    %c0_2 = arith.constant 0 : index
    %c0_3 = arith.constant 0 : index
    %3 = vector.load %arg3[%c0, %c0_1, %c0_2, %c0_3] : memref<1x1x128x27xbf16, #tpu.memory_space<vmem>>, vector<1x1x128x27xbf16>
    %4 = vector.shape_cast %3 : vector<1x1x128x27xbf16> to vector<128x27xbf16>
    %c0_4 = arith.constant 0 : index
    %c0_5 = arith.constant 0 : index
    %c0_6 = arith.constant 0 : index
    %5 = vector.load %arg4[%c0_4, %c0_5, %c0_6] : memref<1x27x128xbf16, #tpu.memory_space<vmem>>, vector<1x27x128xbf16>
    %6 = vector.shape_cast %5 : vector<1x27x128xbf16> to vector<27x128xbf16>
    %cst = arith.constant dense<0.000000e+00> : vector<128x128xf32>
    %7 = tpu.matmul %4, %6, %cst {dimension_numbers = #tpu.dot_dimension_numbers<[1], [0], [0], [1], [0, 0, 1, 1], [], []>} : vector<128x27xbf16>, vector<27x128xbf16>, vector<128x128xf32> -> vector<128x128xf32>
    %c0_7 = arith.constant 0 : index
    %c0_8 = arith.constant 0 : index
    %c0_9 = arith.constant 0 : index
    %8 = vector.load %arg5[%c0_7, %c0_8, %c0_9] : memref<1x1x128xf32, #tpu.memory_space<vmem>>, vector<1x1x128xf32>
    %9 = vector.shape_cast %8 : vector<1x1x128xf32> to vector<1x128xf32>
    %10 = vector.broadcast %9 : vector<1x128xf32> to vector<128x128xf32>
    %11 = arith.addf %7, %10 : vector<128x128xf32>
    %cst_10 = arith.constant 0.000000e+00 : f32
    %12 = vector.broadcast %cst_10 : f32 to vector<128x128xf32>
    %13 = arith.maximumf %11, %12 : vector<128x128xf32>
    %c0_11 = arith.constant 0 : index
    %c0_12 = arith.constant 0 : index
    %14 = vector.load %arg9[%c0_11, %c0_12] : memref<1x128xf32, #tpu.memory_space<vmem>>, vector<1x128xf32>
    %cst_13 = arith.constant dense<0.000000e+00> : vector<128xf32>
    %15 = vector.multi_reduction <add>, %13, %cst_13 [0] : vector<128x128xf32> to vector<128xf32>
    %16 = vector.shape_cast %15 : vector<128xf32> to vector<1x128xf32>
    %17 = arith.addf %14, %16 : vector<1x128xf32>
    %c0_14 = arith.constant 0 : index
    %c0_15 = arith.constant 0 : index
    %18 = vector.load %arg9[%c0_14, %c0_15] : memref<1x128xf32, #tpu.memory_space<vmem>>, vector<1x128xf32>
    tpu.vector_store %arg9[%c0_14, %c0_15], %17 {strides = array<i32>} : memref<1x128xf32, #tpu.memory_space<vmem>>, vector<1x128xf32>,
    %c1_i32 = arith.constant 1 : i32
    %19 = arith.cmpi eq, %arg2, %c1_i32 : i32
    %20 = arith.extui %19 : i1 to i32
    %c0_i32_16 = arith.constant 0 : i32
    %21 = arith.cmpi ne, %20, %c0_i32_16 : i32
    scf.if %21 {
      %c0_17 = arith.constant 0 : index
      %c0_18 = arith.constant 0 : index
      %22 = vector.load %arg9[%c0_17, %c0_18] : memref<1x128xf32, #tpu.memory_space<vmem>>, vector<1x128xf32>
      %cst_19 = arith.constant 3.906250e-03 : f32
      %23 = vector.broadcast %cst_19 : f32 to vector<1x128xf32>
      %24 = arith.mulf %22, %23 : vector<1x128xf32>
      %25 = arith.truncf %24 : vector<1x128xf32> to vector<1x128xbf16>
      %c0_20 = arith.constant 0 : index
      %c0_21 = arith.constant 0 : index
      %c0_22 = arith.constant 0 : index
      %26 = vector.load %arg6[%c0_20, %c0_21, %c0_22] : memref<1x128x32xbf16, #tpu.memory_space<vmem>>, vector<1x128x32xbf16>
      %27 = vector.shape_cast %26 : vector<1x128x32xbf16> to vector<128x32xbf16>
      %cst_23 = arith.constant dense<0.000000e+00> : vector<1x32xf32>
      %28 = tpu.matmul %25, %27, %cst_23 {dimension_numbers = #tpu.dot_dimension_numbers<[1], [0], [0], [1], [0, 0, 1, 1], [], []>} : vector<1x128xbf16>, vector<128x32xbf16>, vector<1x32xf32> -> vector<1x32xf32>
      %c0_24 = arith.constant 0 : index
      %c0_25 = arith.constant 0 : index
      %c0_26 = arith.constant 0 : index
      %29 = vector.load %arg7[%c0_24, %c0_25, %c0_26] : memref<1x1x32xf32, #tpu.memory_space<vmem>>, vector<1x1x32xf32>
      %30 = vector.shape_cast %29 : vector<1x1x32xf32> to vector<1x32xf32>
      %31 = arith.addf %28, %30 : vector<1x32xf32>
      %c0_27 = arith.constant 0 : index
      %c0_28 = arith.constant 0 : index
      %c0_29 = arith.constant 0 : index
      %c0_30 = arith.constant 0 : index
      %32 = vector.load %arg8[%c0_27, %c0_28, %c0_29, %c0_30] : memref<1x1x1x32xf32, #tpu.memory_space<vmem>>, vector<1x1x1x32xf32>
      %33 = vector.shape_cast %32 : vector<1x1x1x32xf32> to vector<1x32xf32>
      %34 = vector.shape_cast %31 : vector<1x32xf32> to vector<1x1x1x32xf32>
      tpu.vector_store %arg8[%c0_27, %c0_28, %c0_29, %c0_30], %34 {strides = array<i32>} : memref<1x1x1x32xf32, #tpu.memory_space<vmem>>, vector<1x1x1x32xf32>,
    } else {
    }
    return
  }
  func.func @transform_0(%arg0: i32, %arg1: i32, %arg2: i32) -> (i32, i32, i32, i32) {
    %c0_i32 = arith.constant 0 : i32
    %c0_i32_0 = arith.constant 0 : i32
    return %arg0, %arg1, %arg2, %c0_i32 : i32, i32, i32, i32
  }
  func.func @transform_1(%arg0: i32, %arg1: i32, %arg2: i32) -> (i32, i32, i32) {
    %c0_i32 = arith.constant 0 : i32
    %c0_i32_0 = arith.constant 0 : i32
    %c0_i32_1 = arith.constant 0 : i32
    return %arg0, %c0_i32, %c0_i32_0 : i32, i32, i32
  }
  func.func @transform_2(%arg0: i32, %arg1: i32, %arg2: i32) -> (i32, i32, i32) {
    %c0_i32 = arith.constant 0 : i32
    %c0_i32_0 = arith.constant 0 : i32
    %c0_i32_1 = arith.constant 0 : i32
    return %arg0, %c0_i32, %c0_i32_0 : i32, i32, i32
  }
  func.func @transform_3(%arg0: i32, %arg1: i32, %arg2: i32) -> (i32, i32, i32) {
    %c0_i32 = arith.constant 0 : i32
    %c0_i32_0 = arith.constant 0 : i32
    %c0_i32_1 = arith.constant 0 : i32
    return %arg0, %c0_i32, %c0_i32_0 : i32, i32, i32
  }
  func.func @transform_4(%arg0: i32, %arg1: i32, %arg2: i32) -> (i32, i32, i32) {
    %c0_i32 = arith.constant 0 : i32
    %c0_i32_0 = arith.constant 0 : i32
    %c0_i32_1 = arith.constant 0 : i32
    return %arg0, %c0_i32, %c0_i32_0 : i32, i32, i32
  }
  func.func @transform_5(%arg0: i32, %arg1: i32, %arg2: i32) -> (i32, i32, i32, i32) {
    %c0_i32 = arith.constant 0 : i32
    %c0_i32_0 = arith.constant 0 : i32
    %c0_i32_1 = arith.constant 0 : i32
    return %arg0, %arg1, %c0_i32, %c0_i32_0 : i32, i32, i32, i32
  }
}

module attributes {stable_mosaic.version = 11 : i64} {
  func.func @_head_kernel(%arg0: i32, %arg1: memref<1x2x32xf32, #tpu.memory_space<vmem>>, %arg2: memref<32x32xbf16, #tpu.memory_space<vmem>>, %arg3: memref<1x32xf32, #tpu.memory_space<vmem>>, %arg4: memref<1x32xf32, #tpu.memory_space<vmem>>, %arg5: memref<1x32xf32, #tpu.memory_space<vmem>>, %arg6: memref<1x32x32xbf16, #tpu.memory_space<vmem>>, %arg7: memref<1x1x32xf32, #tpu.memory_space<vmem>>, %arg8: memref<1x32x16xbf16, #tpu.memory_space<vmem>>, %arg9: memref<1x1x16xf32, #tpu.memory_space<vmem>>, %arg10: memref<1x1x16xf32, #tpu.memory_space<vmem>>, %arg11: memref<1x1x16xf32, #tpu.memory_space<vmem>>, %arg12: memref<1x2x16xf32, #tpu.memory_space<vmem>>) attributes {dimension_semantics = [#tpu.dimension_semantics<parallel>], iteration_bounds = array<i64: 2>, scalar_prefetch = 0 : i64, scratch_operands = 0 : i64, tpu.core_type = #tpu.core_type<tc>, window_params = [{transform_indices = @transform_0, window_bounds = array<i64: 1, 2, 32>}, {pipeline_mode = #tpu.pipeline_mode<synchronous>, transform_indices = @transform_1, window_bounds = array<i64: 32, 32>}, {pipeline_mode = #tpu.pipeline_mode<synchronous>, transform_indices = @transform_2, window_bounds = array<i64: 1, 32>}, {pipeline_mode = #tpu.pipeline_mode<synchronous>, transform_indices = @transform_3, window_bounds = array<i64: 1, 32>}, {pipeline_mode = #tpu.pipeline_mode<synchronous>, transform_indices = @transform_4, window_bounds = array<i64: 1, 32>}, {transform_indices = @transform_5, window_bounds = array<i64: 1, 32, 32>}, {transform_indices = @transform_6, window_bounds = array<i64: 1, 1, 32>}, {transform_indices = @transform_7, window_bounds = array<i64: 1, 32, 16>}, {transform_indices = @transform_8, window_bounds = array<i64: 1, 1, 16>}, {transform_indices = @transform_9, window_bounds = array<i64: 1, 1, 16>}, {transform_indices = @transform_10, window_bounds = array<i64: 1, 1, 16>}, {transform_indices = @transform_11, window_bounds = array<i64: 1, 2, 16>}]} {
    %c0 = arith.constant 0 : index
    %c0_0 = arith.constant 0 : index
    %c0_1 = arith.constant 0 : index
    %0 = vector.load %arg1[%c0, %c0_0, %c0_1] : memref<1x2x32xf32, #tpu.memory_space<vmem>>, vector<1x2x32xf32>
    %1 = vector.shape_cast %0 : vector<1x2x32xf32> to vector<2x32xf32>
    %2 = arith.truncf %1 : vector<2x32xf32> to vector<2x32xbf16>
    %c0_2 = arith.constant 0 : index
    %c0_3 = arith.constant 0 : index
    %3 = vector.load %arg2[%c0_2, %c0_3] : memref<32x32xbf16, #tpu.memory_space<vmem>>, vector<32x32xbf16>
    %cst = arith.constant dense<0.000000e+00> : vector<2x32xf32>
    %4 = tpu.matmul %2, %3, %cst {dimension_numbers = #tpu.dot_dimension_numbers<[1], [0], [0], [1], [0, 0, 1, 1], [], []>} : vector<2x32xbf16>, vector<32x32xbf16>, vector<2x32xf32> -> vector<2x32xf32>
    %c0_4 = arith.constant 0 : index
    %c0_5 = arith.constant 0 : index
    %5 = vector.load %arg3[%c0_4, %c0_5] : memref<1x32xf32, #tpu.memory_space<vmem>>, vector<1x32xf32>
    %6 = vector.broadcast %5 : vector<1x32xf32> to vector<2x32xf32>
    %7 = arith.addf %4, %6 : vector<2x32xf32>
    %8 = arith.addf %7, %1 : vector<2x32xf32>
    %cst_6 = arith.constant dense<0.000000e+00> : vector<2xf32>
    %9 = vector.multi_reduction <add>, %8, %cst_6 [1] : vector<2x32xf32> to vector<2xf32>
    %10 = vector.shape_cast %9 : vector<2xf32> to vector<2x1xf32>
    %cst_7 = arith.constant 3.200000e+01 : f32
    %11 = vector.broadcast %cst_7 : f32 to vector<2x1xf32>
    %12 = arith.divf %10, %11 : vector<2x1xf32>
    %13 = vector.broadcast %12 : vector<2x1xf32> to vector<2x32xf32>
    %14 = arith.subf %8, %13 : vector<2x32xf32>
    %15 = arith.mulf %14, %14 : vector<2x32xf32>
    %cst_8 = arith.constant dense<0.000000e+00> : vector<2xf32>
    %16 = vector.multi_reduction <add>, %15, %cst_8 [1] : vector<2x32xf32> to vector<2xf32>
    %17 = vector.shape_cast %16 : vector<2xf32> to vector<2x1xf32>
    %cst_9 = arith.constant 3.200000e+01 : f32
    %18 = vector.broadcast %cst_9 : f32 to vector<2x1xf32>
    %19 = arith.divf %17, %18 : vector<2x1xf32>
    %20 = vector.broadcast %12 : vector<2x1xf32> to vector<2x32xf32>
    %21 = arith.subf %8, %20 : vector<2x32xf32>
    %cst_10 = arith.constant 9.99999974E-6 : f32
    %22 = vector.broadcast %cst_10 : f32 to vector<2x1xf32>
    %23 = arith.addf %19, %22 : vector<2x1xf32>
    %24 = math.rsqrt %23 : vector<2x1xf32>
    %25 = vector.broadcast %24 : vector<2x1xf32> to vector<2x32xf32>
    %26 = arith.mulf %21, %25 : vector<2x32xf32>
    %c0_11 = arith.constant 0 : index
    %c0_12 = arith.constant 0 : index
    %27 = vector.load %arg4[%c0_11, %c0_12] : memref<1x32xf32, #tpu.memory_space<vmem>>, vector<1x32xf32>
    %28 = vector.broadcast %27 : vector<1x32xf32> to vector<2x32xf32>
    %29 = arith.mulf %26, %28 : vector<2x32xf32>
    %c0_13 = arith.constant 0 : index
    %c0_14 = arith.constant 0 : index
    %30 = vector.load %arg5[%c0_13, %c0_14] : memref<1x32xf32, #tpu.memory_space<vmem>>, vector<1x32xf32>
    %31 = vector.broadcast %30 : vector<1x32xf32> to vector<2x32xf32>
    %32 = arith.addf %29, %31 : vector<2x32xf32>
    %33 = arith.truncf %32 : vector<2x32xf32> to vector<2x32xbf16>
    %c0_15 = arith.constant 0 : index
    %c0_16 = arith.constant 0 : index
    %c0_17 = arith.constant 0 : index
    %34 = vector.load %arg6[%c0_15, %c0_16, %c0_17] : memref<1x32x32xbf16, #tpu.memory_space<vmem>>, vector<1x32x32xbf16>
    %35 = vector.shape_cast %34 : vector<1x32x32xbf16> to vector<32x32xbf16>
    %cst_18 = arith.constant dense<0.000000e+00> : vector<2x32xf32>
    %36 = tpu.matmul %33, %35, %cst_18 {dimension_numbers = #tpu.dot_dimension_numbers<[1], [0], [0], [1], [0, 0, 1, 1], [], []>} : vector<2x32xbf16>, vector<32x32xbf16>, vector<2x32xf32> -> vector<2x32xf32>
    %c0_19 = arith.constant 0 : index
    %c0_20 = arith.constant 0 : index
    %c0_21 = arith.constant 0 : index
    %37 = vector.load %arg7[%c0_19, %c0_20, %c0_21] : memref<1x1x32xf32, #tpu.memory_space<vmem>>, vector<1x1x32xf32>
    %38 = vector.shape_cast %37 : vector<1x1x32xf32> to vector<1x32xf32>
    %39 = vector.broadcast %38 : vector<1x32xf32> to vector<2x32xf32>
    %40 = arith.addf %36, %39 : vector<2x32xf32>
    %cst_22 = arith.constant 0.000000e+00 : f32
    %41 = vector.broadcast %cst_22 : f32 to vector<2x32xf32>
    %42 = arith.maximumf %40, %41 : vector<2x32xf32>
    %43 = arith.truncf %42 : vector<2x32xf32> to vector<2x32xbf16>
    %c0_23 = arith.constant 0 : index
    %c0_24 = arith.constant 0 : index
    %c0_25 = arith.constant 0 : index
    %44 = vector.load %arg8[%c0_23, %c0_24, %c0_25] : memref<1x32x16xbf16, #tpu.memory_space<vmem>>, vector<1x32x16xbf16>
    %45 = vector.shape_cast %44 : vector<1x32x16xbf16> to vector<32x16xbf16>
    %cst_26 = arith.constant dense<0.000000e+00> : vector<2x16xf32>
    %46 = tpu.matmul %43, %45, %cst_26 {dimension_numbers = #tpu.dot_dimension_numbers<[1], [0], [0], [1], [0, 0, 1, 1], [], []>} : vector<2x32xbf16>, vector<32x16xbf16>, vector<2x16xf32> -> vector<2x16xf32>
    %c0_27 = arith.constant 0 : index
    %c0_28 = arith.constant 0 : index
    %c0_29 = arith.constant 0 : index
    %47 = vector.load %arg9[%c0_27, %c0_28, %c0_29] : memref<1x1x16xf32, #tpu.memory_space<vmem>>, vector<1x1x16xf32>
    %48 = vector.shape_cast %47 : vector<1x1x16xf32> to vector<1x16xf32>
    %49 = vector.broadcast %48 : vector<1x16xf32> to vector<2x16xf32>
    %50 = arith.addf %46, %49 : vector<2x16xf32>
    %cst_30 = arith.constant dense<0.000000e+00> : vector<2xf32>
    %51 = vector.multi_reduction <add>, %50, %cst_30 [1] : vector<2x16xf32> to vector<2xf32>
    %52 = vector.shape_cast %51 : vector<2xf32> to vector<2x1xf32>
    %cst_31 = arith.constant 1.600000e+01 : f32
    %53 = vector.broadcast %cst_31 : f32 to vector<2x1xf32>
    %54 = arith.divf %52, %53 : vector<2x1xf32>
    %55 = vector.broadcast %54 : vector<2x1xf32> to vector<2x16xf32>
    %56 = arith.subf %50, %55 : vector<2x16xf32>
    %57 = arith.mulf %56, %56 : vector<2x16xf32>
    %cst_32 = arith.constant dense<0.000000e+00> : vector<2xf32>
    %58 = vector.multi_reduction <add>, %57, %cst_32 [1] : vector<2x16xf32> to vector<2xf32>
    %59 = vector.shape_cast %58 : vector<2xf32> to vector<2x1xf32>
    %cst_33 = arith.constant 1.600000e+01 : f32
    %60 = vector.broadcast %cst_33 : f32 to vector<2x1xf32>
    %61 = arith.divf %59, %60 : vector<2x1xf32>
    %62 = vector.broadcast %54 : vector<2x1xf32> to vector<2x16xf32>
    %63 = arith.subf %50, %62 : vector<2x16xf32>
    %cst_34 = arith.constant 9.99999974E-6 : f32
    %64 = vector.broadcast %cst_34 : f32 to vector<2x1xf32>
    %65 = arith.addf %61, %64 : vector<2x1xf32>
    %66 = math.rsqrt %65 : vector<2x1xf32>
    %67 = vector.broadcast %66 : vector<2x1xf32> to vector<2x16xf32>
    %68 = arith.mulf %63, %67 : vector<2x16xf32>
    %c0_35 = arith.constant 0 : index
    %c0_36 = arith.constant 0 : index
    %c0_37 = arith.constant 0 : index
    %69 = vector.load %arg10[%c0_35, %c0_36, %c0_37] : memref<1x1x16xf32, #tpu.memory_space<vmem>>, vector<1x1x16xf32>
    %70 = vector.shape_cast %69 : vector<1x1x16xf32> to vector<1x16xf32>
    %71 = vector.broadcast %70 : vector<1x16xf32> to vector<2x16xf32>
    %72 = arith.mulf %68, %71 : vector<2x16xf32>
    %c0_38 = arith.constant 0 : index
    %c0_39 = arith.constant 0 : index
    %c0_40 = arith.constant 0 : index
    %73 = vector.load %arg11[%c0_38, %c0_39, %c0_40] : memref<1x1x16xf32, #tpu.memory_space<vmem>>, vector<1x1x16xf32>
    %74 = vector.shape_cast %73 : vector<1x1x16xf32> to vector<1x16xf32>
    %75 = vector.broadcast %74 : vector<1x16xf32> to vector<2x16xf32>
    %76 = arith.addf %72, %75 : vector<2x16xf32>
    %77 = arith.mulf %76, %76 : vector<2x16xf32>
    %cst_41 = arith.constant dense<0.000000e+00> : vector<2xf32>
    %78 = vector.multi_reduction <add>, %77, %cst_41 [1] : vector<2x16xf32> to vector<2xf32>
    %79 = vector.shape_cast %78 : vector<2xf32> to vector<2x1xf32>
    %80 = math.sqrt %79 : vector<2x1xf32>
    %cst_42 = arith.constant 9.99999996E-13 : f32
    %81 = vector.broadcast %cst_42 : f32 to vector<2x1xf32>
    %82 = arith.maximumf %80, %81 : vector<2x1xf32>
    %83 = vector.broadcast %82 : vector<2x1xf32> to vector<2x16xf32>
    %84 = arith.divf %76, %83 : vector<2x16xf32>
    %c0_43 = arith.constant 0 : index
    %c0_44 = arith.constant 0 : index
    %c0_45 = arith.constant 0 : index
    %85 = vector.load %arg12[%c0_43, %c0_44, %c0_45] : memref<1x2x16xf32, #tpu.memory_space<vmem>>, vector<1x2x16xf32>
    %86 = vector.shape_cast %85 : vector<1x2x16xf32> to vector<2x16xf32>
    %87 = vector.shape_cast %84 : vector<2x16xf32> to vector<1x2x16xf32>
    tpu.vector_store %arg12[%c0_43, %c0_44, %c0_45], %87 {strides = array<i32>} : memref<1x2x16xf32, #tpu.memory_space<vmem>>, vector<1x2x16xf32>,
    return
  }
  func.func @transform_0(%arg0: i32) -> (i32, i32, i32) {
    %c0_i32 = arith.constant 0 : i32
    %c0_i32_0 = arith.constant 0 : i32
    %c0_i32_1 = arith.constant 0 : i32
    return %arg0, %c0_i32, %c0_i32_0 : i32, i32, i32
  }
  func.func @transform_1(%arg0: i32) -> (i32, i32) {
    %c0_i32 = arith.constant 0 : i32
    %c0_i32_0 = arith.constant 0 : i32
    %c0_i32_1 = arith.constant 0 : i32
    return %c0_i32, %c0_i32_0 : i32, i32
  }
  func.func @transform_2(%arg0: i32) -> (i32, i32) {
    %c0_i32 = arith.constant 0 : i32
    %c0_i32_0 = arith.constant 0 : i32
    %c0_i32_1 = arith.constant 0 : i32
    return %c0_i32, %c0_i32_0 : i32, i32
  }
  func.func @transform_3(%arg0: i32) -> (i32, i32) {
    %c0_i32 = arith.constant 0 : i32
    %c0_i32_0 = arith.constant 0 : i32
    %c0_i32_1 = arith.constant 0 : i32
    return %c0_i32, %c0_i32_0 : i32, i32
  }
  func.func @transform_4(%arg0: i32) -> (i32, i32) {
    %c0_i32 = arith.constant 0 : i32
    %c0_i32_0 = arith.constant 0 : i32
    %c0_i32_1 = arith.constant 0 : i32
    return %c0_i32, %c0_i32_0 : i32, i32
  }
  func.func @transform_5(%arg0: i32) -> (i32, i32, i32) {
    %c0_i32 = arith.constant 0 : i32
    %c0_i32_0 = arith.constant 0 : i32
    %c0_i32_1 = arith.constant 0 : i32
    return %arg0, %c0_i32, %c0_i32_0 : i32, i32, i32
  }
  func.func @transform_6(%arg0: i32) -> (i32, i32, i32) {
    %c0_i32 = arith.constant 0 : i32
    %c0_i32_0 = arith.constant 0 : i32
    %c0_i32_1 = arith.constant 0 : i32
    return %arg0, %c0_i32, %c0_i32_0 : i32, i32, i32
  }
  func.func @transform_7(%arg0: i32) -> (i32, i32, i32) {
    %c0_i32 = arith.constant 0 : i32
    %c0_i32_0 = arith.constant 0 : i32
    %c0_i32_1 = arith.constant 0 : i32
    return %arg0, %c0_i32, %c0_i32_0 : i32, i32, i32
  }
  func.func @transform_8(%arg0: i32) -> (i32, i32, i32) {
    %c0_i32 = arith.constant 0 : i32
    %c0_i32_0 = arith.constant 0 : i32
    %c0_i32_1 = arith.constant 0 : i32
    return %arg0, %c0_i32, %c0_i32_0 : i32, i32, i32
  }
  func.func @transform_9(%arg0: i32) -> (i32, i32, i32) {
    %c0_i32 = arith.constant 0 : i32
    %c0_i32_0 = arith.constant 0 : i32
    %c0_i32_1 = arith.constant 0 : i32
    return %arg0, %c0_i32, %c0_i32_0 : i32, i32, i32
  }
  func.func @transform_10(%arg0: i32) -> (i32, i32, i32) {
    %c0_i32 = arith.constant 0 : i32
    %c0_i32_0 = arith.constant 0 : i32
    %c0_i32_1 = arith.constant 0 : i32
    return %arg0, %c0_i32, %c0_i32_0 : i32, i32, i32
  }
  func.func @transform_11(%arg0: i32) -> (i32, i32, i32) {
    %c0_i32 = arith.constant 0 : i32
    %c0_i32_0 = arith.constant 0 : i32
    %c0_i32_1 = arith.constant 0 : i32
    return %arg0, %c0_i32, %c0_i32_0 : i32, i32, i32
  }
}

</mosaic_0001>

<bundles_post_ra>
// kernel: cross_view_matcher.2
= control target key start
LH: loop header
LB: loop body
LE: loop exit
PB: predicated region body
PF: predicated region fallthrough
CT: control target
= control target key end

     0   :  { %s1127_s18 = smov 0   ;;  %s1129_s19 = smov 0   ;;  %s1266_s0 = inlined_call_operand.vmem [shape: bf16[2,2,256,27], index: 0, kind: input, shape index: {}]   ;;  %s1267_s1 = inlined_call_operand.vmem [shape: bf16[2,27,128], index: 1, kind: input, shape index: {}]   ;;  %s1268_s2 = inlined_call_operand.vmem [shape: f32[2,1,128], index: 2, kind: input, shape index: {}]   ;;  %s1269_s3 = inlined_call_operand.vmem [shape: bf16[2,128,32], index: 3, kind: input, shape index: {}]   ;;  %s1270_s4 = inlined_call_operand.vmem [shape: f32[2,1,32], index: 4, kind: input, shape index: {}]   ;;  %s1271_s5 = inlined_call_operand.vmem [shape: f32[2,2,1,32], index: 5, kind: output, shape index: {}]  }
   0x1   :  { %s1131_s20 = smov 0   ;;  %s1133_s21 = smov 0  }
   0x2   :  { %s1135_s22 = smov 0   ;;  %s1137_s23 = smov 0  }
   0x3   :  { %s1139_s24 = smov 0  }
   0x4 LB: > { %s27_s25 = sadd.s32 1, %s1079_s21  ;;  %s30_s26 = sadd.s32 1, %s1083_s22  ;;  %s1091_s24 = sphi %s1139_s24, %s15_s24   ;;  %s1087_s23 = sphi %s1137_s23, %s1283_s23   ;;  %s1083_s22 = sphi %s1135_s22, %s1282_s22   ;;  %s1079_s21 = sphi %s1133_s21, %s1281_s21   ;;  %s1075_s20 = sphi %s1131_s20, %s1280_s20   ;;  %s1071_s19 = sphi %s1129_s19, %s1279_s19   ;;  %s1067_s18 = sphi %s1127_s18, %s1278_s18  }
   0x5   : > { %p28_p0 = scmp.ge.s32.totalorder %s27_s25, 2  ;;  %p853_p1 = scmp.ge.s32.totalorder %s1091_s24, 1 }
   0x6   : > { %p257_p2 = scmp.lt.s32.totalorder %s1091_s24, 9  ;;  %s34_s27 = sadd.s32 1, %s1087_s23 }
   0x7   : > { %s1285_s25 = smov (%p28_p0, %s27_s25), 0  ;;  %s1287_s26 = smov (!%p28_p0, %s30_s26), %s1083_s22 }
   0x8   : > { %1272 = sst [smem:[#allocation3_spill]] %s1285_s25  ;;  %p258_p3 = pnand %p853_p1, %p257_p2 }
   0x9   : > { %p32_p4 = scmp.ge.s32.totalorder %s1287_s26, 2  ;;  %s854_s28 = sshll.u32 (!%p258_p3), %s1067_s18, 4 }
   0xa   : > { %261 = sbr.rel (%p258_p3) target bundleno = 530 (0x212), region = 40  ;;  %p312_p6 = scmp.lt.s32.totalorder (!%p258_p3), %s1075_s20, 1 }
   0xb   : > { %s1289_s26 = smov (%p32_p4, %s1287_s26), 0  ;;  %s1291_s27 = smov (!%p32_p4, %s34_s27), %s1087_s23 }
   0xc   : > { %1273 = sst [smem:[#allocation4_spill]] %s1289_s26  ;;  %p36_p5 = scmp.ge.s32.totalorder %s1291_s27, 2 }
   0xd   : > { %p314_p7 = scmp.lt.s32.totalorder (!%p258_p3), %s1071_s19, 1  ;;  %p316_p8 = scmp.lt.s32.totalorder (!%p258_p3), %s854_s28, 31 }
   0xe   : > { %s1293_s27 = smov (%p36_p5, %s1291_s27), 0  ;;  %p863_p9 = scmp.ne.s32.totalorder (!%p258_p3), %s1067_s18, 0 }
   0xf   : > { %1274 = sst [smem:[#allocation5_spill]] %s1293_s27 }
  0x11   : > { %s1295_s20 = smov (!%p312_p6, %s1075_s20), 1  ;;  %s1297_s19 = smov (!%p314_p7, %s1071_s19), 1 }
  0x12   : > { %s1299_s28 = smov (!%p316_p8, %s854_s28), 31  ;;  %s855_s29 = sshll.u32 %s1297_s19, 5  ;;  %v1093_v0 = vmov (!%p863_p9), 0.0  }
  0x13   : > { %s856_s30 = sshll.u32 %s1295_s20, 6  ;;  %s319_s6 = sadd.s32 %s855_s29, %s1299_s28  ;;  %353 = vst [vmem:[#allocation2] sm:$0x1] (!%p863_p9), %v1093_v0 }
  0x14   : > { %s894_s7 = sshll.u32 %s1295_s20, 4  ;;  %s321_s8 = sadd.s32 %s856_s30, %s319_s6 }
  0x15   : > { %s329_s11 = scalar_lea.vmem %s1267_s1, %s894_s7  ;;  %s857_s12 = sshll.u32 %s321_s8, 2 }
  0x16   : > { %s332_s15 = scalar_lea.vmem %s1268_s2, %s1295_s20  ;;  %s1186_s27 = scalar_lea.vmem %s1266_s0, %s857_s12 }
  0x17   : > { %s1191_s28 = scalar_lea.vmem %s1269_s3, %s856_s30  ;;  %s340_s9 = scalar_lea.vmem %s1270_s4, %s1295_s20 }
  0x18   : > { %s862_s7 = sshll.u32 %s1295_s20, 1  ;;  %352 = sbr.rel (%p863_p9) target bundleno = 31 (0x1f), region = 44 }
  0x19   : > { %s1198_s8 = sadd.s32 %s862_s7, %s1297_s19 }
  0x1a   : > { %s347_s14 = scalar_lea.vmem %s1271_s5, %s1198_s8 }
  0x1f PF: > { %v1019_v1 = vld [vmem:[%s329_s11] sm:$0xff]   ;;  %vm457_vm0 = vcmask 1044480   ;;  %v1020_v2 = vld [vmem:[%s329_s11 + $0x8] sm:$0x3f]   ;;  %vm458_vm1 = vcmask 1045504   ;;  %v1094_v3 = vmov 65535  }
  0x20   : > { %915 = vmatprep.subr.bf16.mxu0 %v1019_v1  ;;  %955 = vmatprep.subr.bf16.mxu1 %v1019_v1  ;;  %v459_v4 = vsel %vm457_vm0, 4294967295, %v1094_v3  ;;  %v1021_v5 = vld [vmem:[%s1186_s27] sm:$0xff]   ;;  %vm432_vm2 = vcmask 220160   ;;  %v1022_v8 = vld [vmem:[%s1186_s27 + $0x8] sm:$0xff]   ;;  %v1023_v9 = vld [vmem:[%s1186_s27 + $0x10] sm:$0xff]   ;;  %p883_p10 = scmp.ne.s32.totalorder %s1067_s18, 1 }
  0x21   : > { %916 = vmatpush3.bf16.msra.mxu0 %v1019_v1  ;;  %957 = vmatpush3.bf16.msra.mxu1 %v1019_v1  ;;  %v460_v6 = vsel %vm458_vm1, %v459_v4, 0  ;;  %v1025_v10 = vld [vmem:[%s1186_s27 + $0x20] sm:$0xff]   ;;  %v1026_v11 = vld [vmem:[%s1186_s27 + $0x28] sm:$0xff]   ;;  %v1027_v12 = vld [vmem:[%s1186_s27 + $0x30] sm:$0xff]   ;;  %vm1096_vm3 = vmmov (!%p883_p10), 0   ;;  %vm713_vm4 = vcmask (!%p883_p10), 253952  }
  0x22   : > { %v462_v7 = vand.u32 %v1020_v2, %v460_v6  ;;  %919 = vmatprep.mubr.msk.bf16.mxu0 %vm432_vm2, %v1021_v5  ;;  %927 = vmatprep.mubr.msk.bf16.mxu1 %vm432_vm2, %v1025_v10  ;;  %v1024_v13 = vld [vmem:[%s1186_s27 + $0x18] sm:$0xff]   ;;  %v864_v15 = vld [vmem:[%s332_s15] ss:$0 sm:$0xff] }
  0x23   : > { %v1028_v14 = vld [vmem:[%s1186_s27 + $0x38] sm:$0xff]  }
  0x24   : > { %917 = vmatprep.subr.bf16.mxu0 %v462_v7  ;;  %956 = vmatprep.subr.bf16.mxu1 %v462_v7 }
  0x25   : > { %918 = vmatpush3.bf16.msra.mxu0 %v462_v7  ;;  %958 = vmatpush3.bf16.msra.mxu1 %v462_v7 }
  0x28   : > { %920 = vmatmul.mubr.msk.bf16.vlgmr.msra.gmra.mrb[0].mxu0 %vm432_vm2, %v1022_v8  ;;  %928 = vmatmul.mubr.msk.bf16.vlgmr.msra.gmra.mrb[0].mxu1 %vm432_vm2, %v1026_v11 }
  0x29   : > { %923 = vmatprep.mubr.msk.bf16.mxu0 %vm432_vm2, %v1023_v9  ;;  %931 = vmatprep.mubr.msk.bf16.mxu1 %vm432_vm2, %v1027_v12 }
  0x30   : > { %924 = vmatmul.mubr.msk.bf16.gmra.mrb[4].mxu0 %vm432_vm2, %v1024_v13  ;;  %932 = vmatmul.mubr.msk.bf16.gmra.mrb[4].mxu1 %vm432_vm2, %v1028_v14 }
  0xfb   : > { %v921_v16 = vpop.f32.mrb[0].mxu0  ;;  %v929_v17 = vpop.f32.mrb[0].mxu1 }
  0xfc   : > { %v498_v18 = vpop.f32.mrb[1].mxu0  ;;  %v530_v19 = vpop.f32.mrb[1].mxu1  ;;  %v507_v25 = vadd.f32 %v921_v16, %v864_v15  ;;  %v539_v57 = vadd.f32 %v929_v17, %v864_v15 }
  0xfd   : > { %v499_v20 = vadd.f32 %v864_v15, %v498_v18  ;;  %v922_v21 = vpop.f32.mrb[2].mxu0  ;;  %v930_v22 = vpop.f32.mrb[2].mxu1  ;;  %v531_v50 = vadd.f32 %v864_v15, %v530_v19 }
  0xfe   : > { %v501_v23 = vpop.f32.mrb[3].mxu0  ;;  %v533_v24 = vpop.f32.mrb[3].mxu1  ;;  %v510_v28 = vadd.f32 %v922_v21, %v864_v15  ;;  %v563_v30 = vmax.f32 %v507_v25, 0.0  ;;  %v542_v60 = vadd.f32 %v930_v22, %v864_v15  ;;  %v571_v63 = vmax.f32 %v539_v57, 0.0  ;;  %v577_v21 = vld [vmem:[#allocation2] sm:$0x1] }
  0xff   : > { %v502_v26 = vadd.f32 %v864_v15, %v501_v23  ;;  %v561_v27 = vmax.f32 %v499_v20, 0.0  ;;  %v569_v55 = vmax.f32 %v531_v50, 0.0  ;;  %v534_v56 = vadd.f32 %v864_v15, %v533_v24  ;;  %v1030_v25 = vld [vmem:[%s1191_s28 + $0x8] sm:$0xff] (!%p883_p10)  }
 0x100   : > { %v564_v36 = vmax.f32 %v510_v28, 0.0  ;;  %v572_v1 = vmax.f32 %v542_v60, 0.0  ;;  %v1095_v24 = vmov (!%p883_p10), 0.0   ;;  %v1033_v28 = vld [vmem:[%s1191_s28 + $0x20] sm:$0xff] (!%p883_p10)  }
 0x101   : > { %v562_v29 = vmax.f32 %v502_v26, 0.0  ;;  %v570_v61 = vmax.f32 %v534_v56, 0.0  ;;  %935 = vmatprep.subr.bf16.mxu0 (!%p883_p10), %v1095_v24  ;;  %951 = vmatprep.mubr.msk.bf16.mxu0 (!%p883_p10), %vm1096_vm3, %v1095_v24  ;;  %v1031_v26 = vld [vmem:[%s1191_s28 + $0x10] sm:$0xff] (!%p883_p10)  }
 0x103   : > { %v578_v31 = vadd.f32 %v562_v29, %v561_v27  ;;  %v925_v32 = vpop.f32.mrb[4].mxu0  ;;  %v933_v33 = vpop.f32.mrb[4].mxu1  ;;  %v1032_v27 = vld [vmem:[%s1191_s28 + $0x18] sm:$0xff] (!%p883_p10)   ;;  %v1034_v29 = vld [vmem:[%s1191_s28 + $0x28] sm:$0xff] (!%p883_p10)  }
 0x104   : > { %v514_v34 = vpop.f32.mrb[5].mxu0  ;;  %v546_v35 = vpop.f32.mrb[5].mxu1  ;;  %v523_v43 = vadd.f32 %v925_v32, %v864_v15  ;;  %v555_v5 = vadd.f32 %v933_v33, %v864_v15  ;;  %v1036_v33 = vld [vmem:[%s1191_s28 + $0x38] sm:$0xff] (!%p883_p10)  }
 0x105   : > { %v579_v37 = vadd.f32 %v578_v31, %v563_v30  ;;  %v515_v38 = vadd.f32 %v864_v15, %v514_v34  ;;  %v926_v39 = vpop.f32.mrb[6].mxu0  ;;  %v934_v40 = vpop.f32.mrb[6].mxu1  ;;  %v547_v62 = vadd.f32 %v864_v15, %v546_v35  ;;  %v1035_v30 = vld [vmem:[%s1191_s28 + $0x30] sm:$0xff] (!%p883_p10)   ;;  %v624_v35 = vld [vmem:[%s340_s9] sm:$0x1] (!%p883_p10) }
 0x106   : > { %v517_v41 = vpop.f32.mrb[7].mxu0  ;;  %v549_v42 = vpop.f32.mrb[7].mxu1  ;;  %v526_v48 = vadd.f32 %v926_v39, %v864_v15  ;;  %v567_v51 = vmax.f32 %v523_v43, 0.0  ;;  %v558_v8 = vadd.f32 %v934_v40, %v864_v15  ;;  %v575_v10 = vmax.f32 %v555_v5, 0.0 }
 0x107   : > { %v565_v44 = vmax.f32 %v515_v38, 0.0  ;;  %v580_v45 = vadd.f32 %v579_v37, %v564_v36  ;;  %v518_v46 = vadd.f32 %v864_v15, %v517_v41  ;;  %v573_v3 = vmax.f32 %v547_v62, 0.0 }
 0x108   : > { %v568_v53 = vmax.f32 %v526_v48, 0.0  ;;  %v550_v4 = vadd.f32 %v864_v15, %v549_v42  ;;  %v576_v12 = vmax.f32 %v558_v8, 0.0  ;;  %v1029_v15 = vld [vmem:[%s1191_s28] sm:$0xff] (!%p883_p10)  }
 0x109   : > { %v581_v47 = vadd.f32 %v580_v45, %v565_v44  ;;  %v566_v49 = vmax.f32 %v518_v46, 0.0  ;;  %936 = vmatpush3.bf16.msra.mxu0 (!%p883_p10), %v1029_v15 }
 0x10a   : > { %v574_v9 = vmax.f32 %v550_v4, 0.0  ;;  %937 = vmatprep.subr.bf16.mxu0 (!%p883_p10), %v1095_v24 }
 0x10b   : > { %v582_v52 = vadd.f32 %v581_v47, %v566_v49 }
 0x10d   : > { %v583_v54 = vadd.f32 %v582_v52, %v567_v51  ;;  %938 = vmatpush3.bf16.msra.mxu0 (!%p883_p10), %v1030_v25 }
 0x10e   : > { %939 = vmatprep.subr.bf16.mxu0 (!%p883_p10), %v1095_v24 }
 0x10f   : > { %v584_v58 = vadd.f32 %v583_v54, %v568_v53 }
 0x111   : > { %v585_v59 = vadd.f32 %v584_v58, %v569_v55  ;;  %940 = vmatpush3.bf16.msra.mxu0 (!%p883_p10), %v1031_v26 }
 0x112   : > { %941 = vmatprep.subr.bf16.mxu0 (!%p883_p10), %v1095_v24 }
 0x113   : > { %v586_v0 = vadd.f32 %v585_v59, %v570_v61 }
 0x115   : > { %v587_v2 = vadd.f32 %v586_v0, %v571_v63  ;;  %942 = vmatpush3.bf16.msra.mxu0 (!%p883_p10), %v1032_v27 }
 0x116   : > { %943 = vmatprep.subr.bf16.mxu0 (!%p883_p10), %v1095_v24 }
 0x117   : > { %v588_v6 = vadd.f32 %v587_v2, %v572_v1 }
 0x119   : > { %v589_v7 = vadd.f32 %v588_v6, %v573_v3  ;;  %944 = vmatpush3.bf16.msra.mxu0 (!%p883_p10), %v1033_v28 }
 0x11a   : > { %945 = vmatprep.subr.bf16.mxu0 (!%p883_p10), %v1095_v24 }
 0x11b   : > { %v590_v11 = vadd.f32 %v589_v7, %v574_v9 }
 0x11d   : > { %v591_v13 = vadd.f32 %v590_v11, %v575_v10  ;;  %946 = vmatpush3.bf16.msra.mxu0 (!%p883_p10), %v1034_v29 }
 0x11e   : > { %947 = vmatprep.subr.bf16.mxu0 (!%p883_p10), %v1095_v24 }
 0x11f   : > { %v592_v14 = vadd.f32 %v591_v13, %v576_v12 }
 0x121   : > { %v593_v16 = vrot.slane %v592_v14, 4  ;;  %948 = vmatpush3.bf16.msra.mxu0 (!%p883_p10), %v1035_v30 }
 0x122   : > { %949 = vmatprep.subr.bf16.mxu0 (!%p883_p10), %v1095_v24 }
 0x123   : > { %v594_v17 = vadd.f32 %v593_v16, %v592_v14 }
 0x125   : > { %v595_v18 = vrot.slane %v594_v17, 2  ;;  %950 = vmatpush3.bf16.msra.mxu0 (!%p883_p10), %v1036_v33 }
 0x127   : > { %v596_v19 = vadd.f32 %v595_v18, %v594_v17 }
 0x129   : > { %v597_v20 = vrot.slane %v596_v19, 1  ;;  %604 = sbr.rel (%p883_p10) target bundleno = 530 (0x212), region = 48 }
 0x12b   : > { %v598_v22 = vadd.f32 %v597_v20, %v596_v19 }
 0x12d   : > { %v599_v23 = vadd.f32 %v598_v22, %v577_v21 }
 0x12f   : > { %600 = vst [vmem:[#allocation2] sm:$0x1] %v599_v23 }
 0x136   : > { %v605_v31 = vld [vmem:[#allocation2] sm:$0x1] }
 0x137   : > { %v606_v32 = vmul.f32 0.00390625, %v605_v31 }
 0x139   : > { %v607_v34 = vpack.c.bf16 %v606_v32, %v606_v32 }
 0x13b   : > { %952 = vmatmul.mubr.bf16.vlgmr.msra.gmra.mrb[0].mxu0 %v607_v34 }
 0x20e   : > { %v707_v36 = vpop.f32.mrb[0].mxu0 }
 0x20f   : > { %v708_v37 = vadd.f32 %v707_v36, %v624_v35  ;;  %v953_v38 = vpop.f32.mrb[1].mxu0 }
 0x210   : > { %v710_v39 = vpop.f32.mrb[2].mxu0 }
 0x211   : > { %714 = vst.msk [vmem:[%s347_s14] sm:$0x1] %vm713_vm4, %v708_v37  ;;  %v954_v40 = vpop.f32.mrb[3].mxu0 }
 0x212 PF: > { %s15_s24 = sadd.s32 1, %s1091_s24   ;;  %s1275_s11 = sld [smem:[#allocation3_spill]] }
 0x213   : > { %p12_p11 = scmp.ge.s32.totalorder %s15_s24, 10   ;;  %s1276_s12 = sld [smem:[#allocation4_spill]] }
 0x214   : > { %s1277_s15 = sld [smem:[#allocation5_spill]]  ;;  %s1278_s18 = smov %s1079_s21 }
 0x215   : > { %s1279_s19 = smov %s1083_s22  ;;  %s1280_s20 = smov %s1087_s23 }
 0x216   :  { %14 = sbr.rel (!%p12_p11) target bundleno = 4 (0x4), region = 90 }
 0x218   : > { %s1281_s21 = smov %s1275_s11 }
 0x219   : > { %s1282_s22 = smov %s1276_s12 }
 0x21a   : > { %s1283_s23 = smov %s1277_s15 }

// kernel: cross_view_matcher.3
= control target key start
LH: loop header
LB: loop body
LE: loop exit
PB: predicated region body
PF: predicated region fallthrough
CT: control target
= control target key end

     0   :  { %s1032_s17 = smov 0   ;;  %s1101_s0 = inlined_call_operand.vmem [shape: f32[2,2,32], index: 0, kind: input, shape index: {}]   ;;  %s1102_s1 = inlined_call_operand.vmem [shape: bf16[32,32], index: 1, kind: input, shape index: {}]   ;;  %s1103_s2 = inlined_call_operand.vmem [shape: f32[1,32], index: 2, kind: input, shape index: {}]   ;;  %s1104_s3 = inlined_call_operand.vmem [shape: f32[1,32], index: 3, kind: input, shape index: {}]   ;;  %s1105_s4 = inlined_call_operand.vmem [shape: f32[1,32], index: 4, kind: input, shape index: {}]   ;;  %s1106_s5 = inlined_call_operand.vmem [shape: bf16[2,32,32], index: 5, kind: input, shape index: {}]   ;;  %s1107_s6 = inlined_call_operand.vmem [shape: f32[2,1,32], index: 6, kind: input, shape index: {}]   ;;  %s1108_s7 = inlined_call_operand.vmem [shape: bf16[2,32,16], index: 7, kind: input, shape index: {}]   ;;  %s1109_s8 = inlined_call_operand.vmem [shape: f32[2,1,16], index: 8, kind: input, shape index: {}]   ;;  %s1110_s9 = inlined_call_operand.vmem [shape: f32[2,1,16], index: 9, kind: input, shape index: {}]   ;;  %s1111_s10 = inlined_call_operand.vmem [shape: f32[2,1,16], index: 10, kind: input, shape index: {}]   ;;  %s1112_s11 = inlined_call_operand.vmem [shape: f32[2,2,16], index: 11, kind: output, shape index: {}]  }
   0x1 LB: > { %s874_s18 = sadd.s32 4294967295, %s968_s17   ;;  %p878_p0 = scmp.ge.s32.totalorder %s968_s17, 1  ;;  %s968_s17 = sphi %s1032_s17, %s21_s17  }
   0x2   : > { %p388_p1 = scmp.lt.s32.totalorder %s968_s17, 3 }
   0x4   : > { %p389_p2 = pnand %p878_p0, %p388_p1 }
   0x5   : > { %v948_v0 = vld [vmem:[%s1102_s1] sm:$0xff] (!%p389_p2)   ;;  %v970_v1 = vmov (!%p389_p2), 0.0   ;;  %v949_v2 = vld [vmem:[%s1102_s1 + $0x8] sm:$0xff] (!%p389_p2)   ;;  %vm971_vm0 = vmmov (!%p389_p2), 0   ;;  %p448_p3 = scmp.lt.s32.totalorder (!%p389_p2), %s874_s18, 1  ;;  %vm504_vm1 = vcmask (!%p389_p2), 261120  }
   0x6   : > { %392 = sbr.rel (%p389_p2) target bundleno = 1471 (0x5bf), region = 64  ;;  %914 = vmatprep.subr.bf16.mxu0 (!%p389_p2), %v970_v1  ;;  %922 = vmatprep.subr.bf16.mxu1 (!%p389_p2), %v970_v1  ;;  %v885_v5 = vld [vmem:[%s1103_s2] ss:$0 sm:$0xff] (!%p389_p2)  ;;  %vm549_vm2 = vcmask (!%p389_p2), 254976   ;;  %vm715_vm3 = vcmask (!%p389_p2), 123904  }
   0x7   : > { %915 = vmatpush3.bf16.msra.mxu0 (!%p389_p2), %v948_v0  ;;  %918 = vmatprep.mubr.msk.bf16.mxu0 (!%p389_p2), %vm971_vm0, %v970_v1  ;;  %v889_v25 = vld [vmem:[%s1104_s3] ss:$0 sm:$0xff] (!%p389_p2) }
   0x8   : > { %916 = vmatprep.subr.bf16.mxu0 (!%p389_p2), %v970_v1  ;;  %926 = vmatprep.mubr.msk.bf16.mxu1 (!%p389_p2), %vm971_vm0, %v970_v1  ;;  %v890_v27 = vld [vmem:[%s1105_s4] ss:$0 sm:$0xff] (!%p389_p2) }
   0xb   : > { %917 = vmatpush3.bf16.msra.mxu0 (!%p389_p2), %v949_v2 }
   0xc   : > { %930 = vmatprep.subr.bf16.mxu0 (!%p389_p2), %v970_v1 }
   0xd   : > { %s1114_s18 = smov (!%p448_p3, %s874_s18), 1 }
   0xe   : > { %s879_s23 = sshll.u32 %s1114_s18, 1  ;;  %s903_s29 = sshll.u32 %s1114_s18, 4 }
   0xf   : > { %s451_s26 = scalar_lea.vmem %s1101_s0, %s879_s23  ;;  %s456_s13 = scalar_lea.vmem %s1106_s5, %s903_s29 }
  0x10   : > { %v479_v3 = vld [vmem:[%s451_s26] sm:$0x3]  ;;  %s464_s16 = scalar_lea.vmem %s1108_s7, %s903_s29  ;;  %v951_v19 = vld [vmem:[%s456_s13 + $0x8] sm:$0xff]   ;;  %s459_s26 = scalar_lea.vmem %s1107_s6, %s1114_s18 }
  0x11   : > { %v480_v4 = vpack.c.bf16 %v479_v3, %v479_v3  ;;  %v950_v18 = vld [vmem:[%s456_s13] sm:$0xff]   ;;  %v953_v31 = vld [vmem:[%s464_s16 + $0x8] sm:$0xff]   ;;  %s467_s29 = scalar_lea.vmem %s1109_s8, %s1114_s18  ;;  %s470_s13 = scalar_lea.vmem %s1110_s9, %s1114_s18 }
  0x12   : > { %923 = vmatpush3.bf16.msra.mxu1 %v950_v18  ;;  %v952_v20 = vld [vmem:[%s464_s16] sm:$0xff]   ;;  %s473_s16 = scalar_lea.vmem %s1111_s10, %s1114_s18  ;;  %s477_s21 = scalar_lea.vmem %s1112_s11, %s879_s23 }
  0x13   : > { %919 = vmatmul.mubr.msk.bf16.vlgmr.msra.gmra.mrb[0].mxu0 %vm504_vm1, %v480_v4  ;;  %924 = vmatprep.subr.bf16.mxu1 %v970_v1  ;;  %v891_v32 = vld [vmem:[%s459_s26] ss:$0 sm:$0xff] }
  0x14   : > { %934 = vmatprep.mubr.msk.bf16.mxu0 %vm971_vm0, %v970_v1  ;;  %931 = vmatpush3.bf16.msra.mxu0 %v952_v20  ;;  %v895_v40 = vld [vmem:[%s467_s29] ss:$0 sm:$0xff] }
  0x15   : > { %932 = vmatprep.subr.bf16.mxu0 %v970_v1  ;;  %v899_v56 = vld [vmem:[%s470_s13] ss:$0 sm:$0xff] }
  0x16   : > { %925 = vmatpush3.bf16.msra.mxu1 %v951_v19  ;;  %v900_v58 = vld [vmem:[%s473_s16] ss:$0 sm:$0xff] }
  0x18   : > { %933 = vmatpush3.bf16.msra.mxu0 %v953_v31 }
  0xe6   : > { %v542_v6 = vpop.f32.mrb[0].mxu0 }
  0xe7   : > { %v543_v7 = vadd.f32 %v885_v5, %v542_v6  ;;  %v920_v8 = vpop.f32.mrb[1].mxu0 }
  0xe8   : > { %v545_v9 = vpop.f32.mrb[2].mxu0 }
  0xe9   : > { %v921_v10 = vpop.f32.mrb[3].mxu0  ;;  %v548_v11 = vadd.f32 %v543_v7, %v479_v3 }
  0xeb   : > { %v550_v12 = vsel %vm549_vm2, %v548_v11, 0.0 }
  0xec   : > { %551 = vadd.xlane.f32.xlu0 %v550_v12 }
 0x179   : > { %v552_v13 = vpop.xlane.xlu0 %551 }
 0x17a   : > { %v554_v14 = vmul.f32 0.03125, %v552_v13 }
 0x17c   : > { %v555_v15 = vsub.f32 %v548_v11, %v554_v14 }
 0x17e   : > { %v556_v16 = vmul.f32 %v555_v15, %v555_v15 }
 0x180   : > { %v557_v17 = vsel %vm549_vm2, %v556_v16, 0.0 }
 0x181   : > { %558 = vadd.xlane.f32.xlu0 %v557_v17 }
 0x20e   : > { %v559_v21 = vpop.xlane.xlu0 %558 }
 0x20f   : > { %v560_v22 = vmul.f32 0.03125, %v559_v21 }
 0x211   : > { %v561_v23 = vadd.f32 1e-05, %v560_v22 }
 0x213   : > { %954 = vrsqrt.f32 %v561_v23 }
 0x21d   : > { %v955_v24 = vpop.eup %954 }
 0x21e   : > { %v563_v26 = vmul.f32 %v955_v24, %v555_v15 }
 0x220   : > { %v571_v28 = vmul.f32 %v889_v25, %v563_v26 }
 0x222   : > { %v579_v29 = vadd.f32 %v890_v27, %v571_v28 }
 0x224   : > { %v580_v30 = vpack.c.bf16 %v579_v29, %v579_v29 }
 0x226   : > { %927 = vmatmul.mubr.msk.bf16.vlgmr.msra.gmra.mrb[0].mxu1 %vm504_vm1, %v580_v30 }
 0x2f9   : > { %v641_v33 = vpop.f32.mrb[0].mxu1 }
 0x2fa   : > { %v642_v34 = vadd.f32 %v891_v32, %v641_v33  ;;  %v928_v35 = vpop.f32.mrb[1].mxu1 }
 0x2fb   : > { %v644_v36 = vpop.f32.mrb[2].mxu1 }
 0x2fc   : > { %v647_v37 = vmax.f32 %v642_v34, 0.0  ;;  %v929_v38 = vpop.f32.mrb[3].mxu1 }
 0x2fe   : > { %v648_v39 = vpack.c.bf16 %v647_v37, %v647_v37 }
 0x300   : > { %935 = vmatmul.mubr.msk.bf16.vlgmr.msra.gmra.mrb[4].mxu0 %vm504_vm1, %v648_v39 }
 0x3d3   : > { %v709_v41 = vpop.f32.mrb[4].mxu0 }
 0x3d4   : > { %v710_v42 = vadd.f32 %v895_v40, %v709_v41  ;;  %v936_v43 = vpop.f32.mrb[5].mxu0 }
 0x3d5   : > { %v712_v44 = vpop.f32.mrb[6].mxu0 }
 0x3d6   : > { %v937_v45 = vpop.f32.mrb[7].mxu0  ;;  %v716_v46 = vsel %vm715_vm3, %v710_v42, 0.0 }
 0x3d7   : > { %717 = vadd.xlane.f32.xlu1 %v716_v46 }
 0x464   : > { %v718_v47 = vpop.xlane.xlu1 %717 }
 0x465   : > { %v720_v48 = vmul.f32 0.0625, %v718_v47 }
 0x467   : > { %v721_v49 = vsub.f32 %v710_v42, %v720_v48 }
 0x469   : > { %v722_v50 = vmul.f32 %v721_v49, %v721_v49 }
 0x46b   : > { %v723_v51 = vsel %vm715_vm3, %v722_v50, 0.0 }
 0x46c   : > { %724 = vadd.xlane.f32.xlu1 %v723_v51 }
 0x4f9   : > { %v725_v52 = vpop.xlane.xlu1 %724 }
 0x4fa   : > { %v726_v53 = vmul.f32 0.0625, %v725_v52 }
 0x4fc   : > { %v727_v54 = vadd.f32 1e-05, %v726_v53 }
 0x4fe   : > { %956 = vrsqrt.f32 %v727_v54 }
 0x508   : > { %v957_v55 = vpop.eup %956 }
 0x509   : > { %v729_v57 = vmul.f32 %v957_v55, %v721_v49 }
 0x50b   : > { %v737_v59 = vmul.f32 %v899_v56, %v729_v57 }
 0x50d   : > { %v745_v60 = vadd.f32 %v900_v58, %v737_v59 }
 0x50f   : > { %v746_v61 = vmul.f32 %v745_v60, %v745_v60 }
 0x511   : > { %v747_v62 = vsel %vm715_vm3, %v746_v61, 0.0 }
 0x512   : > { %748 = vadd.xlane.f32.xlu0 %v747_v62 }
 0x59f   : > { %v749_v63 = vpop.xlane.xlu0 %748 }
 0x5a0   : > { %958 = vrsqrt.f32 %v749_v63  ;;  %vm752_vm4 = vcmp.eq.f32.partialorder %v749_v63, inf  ;;  %v755_v2 = vand.u32 2147483648, %v749_v63  ;;  %vm754_vm5 = vcmp.eq.f32.partialorder %v749_v63, 0.0 }
 0x5aa   : > { %v959_v0 = vpop.eup %958 }
 0x5ab   : > { %v751_v1 = vmul.f32 %v959_v0, %v749_v63 }
 0x5ad   : > { %v753_v3 = vsel %vm752_vm4, %v749_v63, %v751_v1 }
 0x5ae   : > { %v756_v4 = vsel %vm754_vm5, %v755_v2, %v753_v3 }
 0x5af   : > { %v757_v5 = vmax.f32 %v756_v4, 1e-12 }
 0x5b1   : > { %960 = vrcp.f32 %v757_v5 }
 0x5bb   : > { %v961_v6 = vpop.eup %960 }
 0x5bc   : > { %v759_v7 = vmul.f32 %v961_v6, %v745_v60 }
 0x5be   : > { %760 = vst.msk [vmem:[%s477_s21] sm:$0x3] %vm715_vm3, %v759_v7 }
 0x5bf PF: > { %s21_s17 = sadd.s32 1, %s968_s17  }
 0x5c0   : > { %p18_p4 = scmp.ge.s32.totalorder %s21_s17, 4  }
 0x5c2   :  { %20 = sbr.rel (!%p18_p4) target bundleno = 1 (0x1), region = 112 }

</bundles_post_ra>
